<compile_context>
chip_gen: v7x
topology: tpu7x:2x2x1
jax: 0.10.0
libtpu: 0.0.40
codegen_flags: <defaults>
</compile_context>

<pallas_src>
import math

import jax
import jax.numpy as jnp
from jax.experimental import pallas as pl
from jax.experimental.pallas import tpu as pltpu


# --------------------------------------------------------------------------- kernel


def _ci_time_attn_kernel(q_ref, k_ref, vm_ref, vmean_ref,
                         wq_ref, bq_ref, wk_ref, bk_ref, wo_ref, bo_ref,
                         o_ref, qp_sc, m_sc, nd_sc):
    Bb, Qlen, E = q_ref.shape
    _, Lt, D2 = vm_ref.shape
    D = D2 // 2
    f32 = jnp.float32

    l_idx = pl.program_id(1)
    n_l = pl.num_programs(1)

    @pl.when(l_idx == 0)
    def _init():
        # Query projection once per batch block (its index_map is constant over the
        # time axis, so the tile is already resident). 1/sqrt(d_k) is folded into
        # W_q / b_q at trace time.
        q2 = q_ref[...].reshape(Bb * Qlen, E)
        qp = jnp.dot(q2, wq_ref[...], preferred_element_type=f32) + bq_ref[...]
        qp_sc[...] = qp.reshape(Bb, Qlen, E)
        m_sc[...] = jnp.full(m_sc.shape, -jnp.inf, f32)
        nd_sc[...] = jnp.zeros(nd_sc.shape, f32)

    # Key projection for this time tile: one flattened MXU matmul over the batch block.
    k2 = k_ref[...].reshape(Bb * Lt, E)
    kp = (jnp.dot(k2, wk_ref[...], preferred_element_type=f32)
          + bk_ref[...]).reshape(Bb, Lt, E)

    # Attention scores for this time tile. Kept in f32: they feed exp(), and this
    # matmul is tiny relative to the DMA streams (the kernel is memory-bound).
    scores = jnp.einsum("bqe,ble->bql", qp_sc[...], kp,
                        preferred_element_type=f32)                    # (Bb, Q, Lt)

    # Online (running-max) softmax accumulation across time tiles. Masked terms
    # contribute exactly 0 (mask multiplies the exp weights), so this equals the
    # reference masked_fill(-1e9) softmax for any channel with >=1 valid step.
    m_prev = m_sc[...]                                                 # (Bb, Q, 1)
    m_new = jnp.maximum(m_prev, jnp.max(scores, axis=-1, keepdims=True))
    alpha = jnp.exp(m_prev - m_new)                                    # f32 (EUP)
    exp_s = jnp.exp(scores - m_new)                                    # f32 (EUP)

    # Fused numerator/denominator: one MXU matmul against the streamed
    # [mask*value || mask] tile (stream-dtype operands, f32 accumulation).
    nd = jnp.einsum("bql,blc->bqc", exp_s.astype(vm_ref.dtype), vm_ref[...],
                    preferred_element_type=f32)                        # (Bb, Q, 2D)
    nd_sc[...] = alpha * nd_sc[...] + nd
    m_sc[...] = m_new

    @pl.when(l_idx == n_l - 1)
    def _finalize():
        nd_all = nd_sc[...]
        num = nd_all[..., :D]
        den = nd_all[..., D:]
        # Fully-masked channel: reference's masked_fill(-1e9) softmax degrades to a
        # uniform average over time; reproduce that instead of producing 0/0.
        v_mean = jnp.broadcast_to(vmean_ref[...], (Bb, Qlen, D))
        inv_den = pl.reciprocal(jnp.maximum(den, 1e-30), approx=True)  # EUP
        ctx = jnp.where(den > 0.0, num * inv_den, v_mean)              # (Bb, Q, D) f32
        # Output projection; output is a flat (Bb*Q, H) slab (no in-kernel 3-D reshape).
        out = jnp.dot(ctx.reshape(Bb * Qlen, D).astype(wo_ref.dtype), wo_ref[...],
                      preferred_element_type=f32) + bo_ref[...]
        o_ref[...] = out.astype(o_ref.dtype)


# ------------------------------------------------------------------ sizing heuristics


def _rup(x, m):
    return (x + m - 1) // m * m


def _tile_bytes(shape, itemsize):
    """Padded VMEM footprint of a block: last dim -> 128 lanes, 2nd-last -> 8 sublanes."""
    pad = list(shape)
    pad[-1] = _rup(pad[-1], 128)
    pad[-2] = _rup(pad[-2], 8)
    n = 1
    for d in pad:
        n *= d
    return n * itemsize


def _default_vmem_limit_bytes():
    """~3/4 of physical VMEM (96 MiB on v5e/v6e, 48 MiB on v7x); safe fallback 48 MiB."""
    try:
        info = pltpu.get_tpu_info()
        cap = getattr(info, "vmem_capacity_bytes", None)
        if cap:
            return min(int(cap) * 3 // 4, 100 * 1024 * 1024)
    except Exception:
        pass
    return 48 * 1024 * 1024


def _pick_time_block(L, max_block=512):
    """Largest divisor of L that is a multiple of 8 and <= max_block (or L itself)."""
    if L <= max_block:
        return L
    for t in range(max_block - max_block % 8, 7, -8):
        if L % t == 0:
            return t
    return L


def _pick_batch_block(B, Qlen, Lt, E, D, H, stream_itemsize,
                      vmem_limit_bytes, min_batch_grid):
    """Largest divisor of B fitting 0.8*VMEM budget, keeping >= min_batch_grid steps."""
    budget = int(0.8 * vmem_limit_bytes)
    # One-time (2x-buffered) weight / bias tiles.
    fixed = 2 * (2 * _tile_bytes((E, E), stream_itemsize)
                 + _tile_bytes((D, H), stream_itemsize)
                 + 2 * _tile_bytes((1, E), 4) + _tile_bytes((1, H), 4))
    budget -= fixed
    # Per-batch-element streamed tiles (double-buffered by the pipeline).
    per_b_stream = 2 * (_tile_bytes((1, Qlen, E), stream_itemsize)
                        + _tile_bytes((1, Lt, E), stream_itemsize)
                        + _tile_bytes((1, Lt, 2 * D), stream_itemsize)
                        + _tile_bytes((1, 1, D), 4)
                        + _tile_bytes((Qlen, H), 4))
    per_b_scratch = (_tile_bytes((1, Qlen, E), 4) + _tile_bytes((1, Qlen, 1), 4)
                     + _tile_bytes((1, Qlen, 2 * D), 4))
    # Live in-kernel intermediates (f32): kp, scores/exp_s, num_den, ctx, projections.
    per_b_live = (2 * _tile_bytes((Lt, E), 4) + 3 * _tile_bytes((Qlen, Lt), 4)
                  + 2 * _tile_bytes((Qlen, 2 * D), 4) + 2 * _tile_bytes((Qlen, E), 4)
                  + 2 * _tile_bytes((Qlen, D), 4) + _tile_bytes((Qlen, H), 4))
    per_b = per_b_stream + per_b_scratch + per_b_live

    bb = max(1, budget // max(per_b, 1))
    # Keep the parallel batch axis long enough for megacore + pipeline overlap.
    bb = min(bb, B, max(1, B // min_batch_grid))
    while B % bb:
        bb -= 1
    # Flattened output block rows (bb*Qlen) must be a multiple of 8 unless full-extent.
    while bb < B and (bb * Qlen) % 8 != 0:
        bb += 1
        while B % bb:
            bb += 1
    if (bb * Qlen) % 8 != 0 and bb != B:
        bb = B
    return bb


# -------------------------------------------------------------------------- wrapper


def channel_independent_time_attention(query, key, value, mask, params,
                                       batch_block=None, time_block=None,
                                       stream_dtype=jnp.bfloat16,
                                       vmem_limit_bytes=None,
                                       min_batch_grid=4):
    """Pallas forward of ChannelIndependentTimeAttention (num_heads=1, dropout=None).

    query:(B,Q,E) key:(B,L,E) value:(B,L,D) mask:(B,L,D) with mask in {0,1}.
    Returns (B, Q, nhidden) float32.
    """
    B, Qlen, E = query.shape
    _, L, D = value.shape
    H = params["wo"].shape[0]
    f32 = jnp.float32

    value_f = value.astype(f32)
    mask_f = mask.astype(f32)

    # Trace-time weight transforms: (in, out) layout; 1/sqrt(d_k) folded into W_q/b_q.
    inv_sqrt_dk = 1.0 / math.sqrt(E)
    wq_t = (params["wq"].astype(f32).T * inv_sqrt_dk).astype(stream_dtype)   # (E, E)
    wk_t = params["wk"].astype(f32).T.astype(stream_dtype)                   # (E, E)
    wo_t = params["wo"].astype(f32).T.astype(stream_dtype)                   # (D, H)
    bq = (params["bq"].astype(f32) * inv_sqrt_dk).reshape(1, E)              # f32
    bk = params["bk"].astype(f32).reshape(1, E)
    bo = params["bo"].astype(f32).reshape(1, H)

    q_s = query.astype(stream_dtype)
    k_s = key.astype(stream_dtype)
    # Fused masked-value stream: [mask*value || mask] -> one DMA stream and one MXU
    # matmul for the softmax numerator and denominator.
    vm_cat = jnp.concatenate([mask_f * value_f, mask_f], axis=-1).astype(stream_dtype)
    # Fallback for fully-masked channels (reference degrades to a uniform time average).
    v_mean = jnp.mean(value_f, axis=1, keepdims=True)                        # (B, 1, D)

    if vmem_limit_bytes is None:
        vmem_limit_bytes = _default_vmem_limit_bytes()
    if time_block is None:
        time_block = _pick_time_block(L)
    assert L % time_block == 0 and (time_block % 8 == 0 or time_block == L), \
        (L, time_block)
    if batch_block is None:
        batch_block = _pick_batch_block(B, Qlen, time_block, E, D, H,
                                        jnp.dtype(stream_dtype).itemsize,
                                        vmem_limit_bytes, min_batch_grid)
    assert B % batch_block == 0, (B, batch_block)
    assert (batch_block * Qlen) % 8 == 0 or batch_block == B, (batch_block, Qlen)

    grid = (B // batch_block, L // time_block)

    out_flat = pl.pallas_call(
        _ci_time_attn_kernel,
        out_shape=jax.ShapeDtypeStruct((B * Qlen, H), f32),
        grid_spec=pltpu.PrefetchScalarGridSpec(
            num_scalar_prefetch=0,
            grid=grid,
            in_specs=[
                pl.BlockSpec((batch_block, Qlen, E), lambda b, l: (b, 0, 0)),        # query
                pl.BlockSpec((batch_block, time_block, E), lambda b, l: (b, l, 0)),  # key
                pl.BlockSpec((batch_block, time_block, 2 * D),
                             lambda b, l: (b, l, 0)),                                # mv||mask
                pl.BlockSpec((batch_block, 1, D), lambda b, l: (b, 0, 0)),           # v_mean
                pl.BlockSpec((E, E), lambda b, l: (0, 0)),                           # W_q^T/sqrt(dk)
                pl.BlockSpec((1, E), lambda b, l: (0, 0)),                           # b_q/sqrt(dk)
                pl.BlockSpec((E, E), lambda b, l: (0, 0)),                           # W_k^T
                pl.BlockSpec((1, E), lambda b, l: (0, 0)),                           # b_k
                pl.BlockSpec((D, H), lambda b, l: (0, 0)),                           # W_out^T
                pl.BlockSpec((1, H), lambda b, l: (0, 0)),                           # b_out
            ],
            out_specs=pl.BlockSpec((batch_block * Qlen, H), lambda b, l: (b, 0)),
            scratch_shapes=[
                pltpu.VMEM((batch_block, Qlen, E), f32),        # projected queries
                pltpu.VMEM((batch_block, Qlen, 1), f32),        # running row max
                pltpu.VMEM((batch_block, Qlen, 2 * D), f32),    # running [num || den]
            ],
        ),
        compiler_params=pltpu.CompilerParams(
            dimension_semantics=("parallel", "arbitrary"),
            vmem_limit_bytes=vmem_limit_bytes,
        ),
    )(q_s, k_s, vm_cat, v_mean, wq_t, bq, wk_t, bk, wo_t, bo)

    return out_flat.reshape(B, Qlen, H)


# ---------------------------------------------------------------- reference & init


def reference_forward(query, key, value, mask, params):
    """Pure-JAX replica of the PyTorch forward (num_heads=1, dropout=None)."""
    E = query.shape[-1]
    qp = query @ params["wq"].T + params["bq"]                    # (B, Q, E)
    kp = key @ params["wk"].T + params["bk"]                      # (B, L, E)
    scores = jnp.einsum("bqe,bke->bqk", qp, kp) / math.sqrt(E)    # (B, Q, L)
    B, Qlen, L = scores.shape
    D = value.shape[-1]
    s = jnp.broadcast_to(scores[..., None], (B, Qlen, L, D))
    s = jnp.where(mask[:, None, :, :] == 0, -1e9, s)
    p = jax.nn.softmax(s, axis=-2)
    ctx = jnp.sum(p * value[:, None, :, :], axis=-2)              # (B, Q, D)
    return ctx @ params["wo"].T + params["bo"]                    # (B, Q, H)


def init_params(key, input_dim, nhidden, embed_time):
    """Deterministic init mimicking nn.Linear defaults U(-1/sqrt(fan_in), +)."""
    ks = jax.random.split(key, 6)

    def unif(k, shape, fan_in):
        bound = 1.0 / math.sqrt(fan_in)
        return jax.random.uniform(k, shape, jnp.float32, -bound, bound)

    return {
        "wq": unif(ks[0], (embed_time, embed_time), embed_time),
        "bq": unif(ks[1], (embed_time,), embed_time),
        "wk": unif(ks[2], (embed_time, embed_time), embed_time),
        "bk": unif(ks[3], (embed_time,), embed_time),
        "wo": unif(ks[4], (nhidden, input_dim), input_dim),   # num_heads=1
        "bo": unif(ks[5], (nhidden,), input_dim),
    }


# ------------------------------------------------------------------------------ main


if __name__ == "__main__":
    B, Qlen, L = 4, 8, 16
    input_dim, nhidden, embed_time = 4, 32, 16

    root = jax.random.PRNGKey(0)
    kq, kk, kv, km, kp = jax.random.split(root, 5)

    query = jax.random.normal(kq, (B, Qlen, embed_time), jnp.float32)
    key_in = jax.random.normal(kk, (B, L, embed_time), jnp.float32)
    value = jax.random.normal(kv, (B, L, input_dim), jnp.float32)
    mask = jax.random.bernoulli(km, 0.7, (B, L, input_dim)).astype(jnp.float32)

    params = init_params(kp, input_dim, nhidden, embed_time)
    ref = reference_forward(query, key_in, value, mask, params)

    def check(out, expect, tol, name):
        out = jax.block_until_ready(out)
        assert out.shape == expect.shape, (name, out.shape, expect.shape)
        if not jnp.allclose(out, expect, rtol=tol, atol=tol):
            raise AssertionError(
                f"{name}: max abs diff {jnp.max(jnp.abs(out - expect))}")

    # 1) f32 streams, single time tile — near-exact-parity path.
    out = channel_independent_time_attention(query, key_in, value, mask, params,
                                             stream_dtype=jnp.float32)
    check(out, ref, 2e-3, "f32")

    # 2) f32 streams, online softmax over 2 time tiles (L tiled for large-L / v7x VMEM).
    out = channel_independent_time_attention(query, key_in, value, mask, params,
                                             stream_dtype=jnp.float32, time_block=8)
    check(out, ref, 2e-3, "f32/online")

    # 3) bf16 streams (default fast path; halves HBM DMA bytes, f32 accumulation).
    out = channel_independent_time_attention(query, key_in, value, mask, params)
    check(out, ref, 3e-2, "bf16")

    # 4) Fully-masked-channel edge case on the bf16 online-softmax path
    #    (must match reference's uniform time-average fallback).
    mask_edge = mask.at[0, :, 0].set(0.0)
    ref_edge = reference_forward(query, key_in, value, mask_edge, params)
    out = channel_independent_time_attention(query, key_in, value, mask_edge, params,
                                             time_block=8)
    check(out, ref_edge, 3e-2, "bf16/edge")

    print("KERNEL_OK")
</pallas_src>

<mosaic_0001>
module attributes {stable_mosaic.version = 11 : i64} {
  func.func @_ci_time_attn_kernel(%arg0: i32, %arg1: i32, %arg2: memref<1x8x16xf32, #tpu.memory_space<vmem>>, %arg3: memref<1x16x16xf32, #tpu.memory_space<vmem>>, %arg4: memref<1x16x8xf32, #tpu.memory_space<vmem>>, %arg5: memref<1x1x4xf32, #tpu.memory_space<vmem>>, %arg6: memref<16x16xf32, #tpu.memory_space<vmem>>, %arg7: memref<1x16xf32, #tpu.memory_space<vmem>>, %arg8: memref<16x16xf32, #tpu.memory_space<vmem>>, %arg9: memref<1x16xf32, #tpu.memory_space<vmem>>, %arg10: memref<4x32xf32, #tpu.memory_space<vmem>>, %arg11: memref<1x32xf32, #tpu.memory_space<vmem>>, %arg12: memref<8x32xf32, #tpu.memory_space<vmem>>, %arg13: memref<1x8x16xf32, #tpu.memory_space<vmem>>, %arg14: memref<1x8x1xf32, #tpu.memory_space<vmem>>, %arg15: memref<1x8x8xf32, #tpu.memory_space<vmem>>) attributes {dimension_semantics = [#tpu.dimension_semantics<parallel>, #tpu.dimension_semantics<arbitrary>], iteration_bounds = array<i64: 4, 1>, scalar_prefetch = 0 : i64, scratch_operands = 3 : i64, tpu.core_type = #tpu.core_type<tc>, window_params = [{transform_indices = @transform_0, window_bounds = array<i64: 1, 8, 16>}, {transform_indices = @transform_1, window_bounds = array<i64: 1, 16, 16>}, {transform_indices = @transform_2, window_bounds = array<i64: 1, 16, 8>}, {transform_indices = @transform_3, window_bounds = array<i64: 1, 1, 4>}, {pipeline_mode = #tpu.pipeline_mode<synchronous>, transform_indices = @transform_4, window_bounds = array<i64: 16, 16>}, {pipeline_mode = #tpu.pipeline_mode<synchronous>, transform_indices = @transform_5, window_bounds = array<i64: 1, 16>}, {pipeline_mode = #tpu.pipeline_mode<synchronous>, transform_indices = @transform_6, window_bounds = array<i64: 16, 16>}, {pipeline_mode = #tpu.pipeline_mode<synchronous>, transform_indices = @transform_7, window_bounds = array<i64: 1, 16>}, {pipeline_mode = #tpu.pipeline_mode<synchronous>, transform_indices = @transform_8, window_bounds = array<i64: 4, 32>}, {pipeline_mode = #tpu.pipeline_mode<synchronous>, transform_indices = @transform_9, window_bounds = array<i64: 1, 32>}, {transform_indices = @transform_10, window_bounds = array<i64: 8, 32>}]} {
    %c0_i32 = arith.constant 0 : i32
    %0 = arith.cmpi eq, %arg1, %c0_i32 : i32
    %1 = arith.extui %0 : i1 to i32
    %c0_i32_0 = arith.constant 0 : i32
    %2 = arith.cmpi ne, %1, %c0_i32_0 : i32
    scf.if %2 {
      %c0_30 = arith.constant 0 : index
      %c0_31 = arith.constant 0 : index
      %c0_32 = arith.constant 0 : index
      %33 = vector.load %arg2[%c0_30, %c0_31, %c0_32] : memref<1x8x16xf32, #tpu.memory_space<vmem>>, vector<1x8x16xf32>
      %34 = vector.shape_cast %33 : vector<1x8x16xf32> to vector<8x16xf32>
      %c0_33 = arith.constant 0 : index
      %c0_34 = arith.constant 0 : index
      %35 = vector.load %arg6[%c0_33, %c0_34] : memref<16x16xf32, #tpu.memory_space<vmem>>, vector<16x16xf32>
      %cst_35 = arith.constant dense<0.000000e+00> : vector<8x16xf32>
      %36 = tpu.matmul %34, %35, %cst_35 {dimension_numbers = #tpu.dot_dimension_numbers<[1], [0], [0], [1], [0, 0, 1, 1], [], []>} : vector<8x16xf32>, vector<16x16xf32>, vector<8x16xf32> -> vector<8x16xf32>
      %c0_36 = arith.constant 0 : index
      %c0_37 = arith.constant 0 : index
      %37 = vector.load %arg7[%c0_36, %c0_37] : memref<1x16xf32, #tpu.memory_space<vmem>>, vector<1x16xf32>
      %38 = vector.broadcast %37 : vector<1x16xf32> to vector<8x16xf32>
      %39 = arith.addf %36, %38 : vector<8x16xf32>
      %40 = vector.shape_cast %39 : vector<8x16xf32> to vector<1x8x16xf32>
      %c0_38 = arith.constant 0 : index
      %c0_39 = arith.constant 0 : index
      %c0_40 = arith.constant 0 : index
      %41 = vector.load %arg13[%c0_38, %c0_39, %c0_40] : memref<1x8x16xf32, #tpu.memory_space<vmem>>, vector<1x8x16xf32>
      tpu.vector_store %arg13[%c0_38, %c0_39, %c0_40], %40 {strides = array<i32>} : memref<1x8x16xf32, #tpu.memory_space<vmem>>, vector<1x8x16xf32>,
      %cst_41 = arith.constant 0xFF800000 : f32
      %42 = vector.broadcast %cst_41 : f32 to vector<1x8x1xf32>
      %c0_42 = arith.constant 0 : index
      %c0_43 = arith.constant 0 : index
      %c0_44 = arith.constant 0 : index
      %43 = vector.load %arg14[%c0_42, %c0_43, %c0_44] : memref<1x8x1xf32, #tpu.memory_space<vmem>>, vector<1x8x1xf32>
      tpu.vector_store %arg14[%c0_42, %c0_43, %c0_44], %42 {strides = array<i32>} : memref<1x8x1xf32, #tpu.memory_space<vmem>>, vector<1x8x1xf32>,
      %cst_45 = arith.constant 0.000000e+00 : f32
      %44 = vector.broadcast %cst_45 : f32 to vector<1x8x8xf32>
      %c0_46 = arith.constant 0 : index
      %c0_47 = arith.constant 0 : index
      %c0_48 = arith.constant 0 : index
      %45 = vector.load %arg15[%c0_46, %c0_47, %c0_48] : memref<1x8x8xf32, #tpu.memory_space<vmem>>, vector<1x8x8xf32>
      tpu.vector_store %arg15[%c0_46, %c0_47, %c0_48], %44 {strides = array<i32>} : memref<1x8x8xf32, #tpu.memory_space<vmem>>, vector<1x8x8xf32>,
    } else {
    }
    %c0 = arith.constant 0 : index
    %c0_1 = arith.constant 0 : index
    %c0_2 = arith.constant 0 : index
    %3 = vector.load %arg3[%c0, %c0_1, %c0_2] : memref<1x16x16xf32, #tpu.memory_space<vmem>>, vector<1x16x16xf32>
    %4 = vector.shape_cast %3 : vector<1x16x16xf32> to vector<16x16xf32>
    %c0_3 = arith.constant 0 : index
    %c0_4 = arith.constant 0 : index
    %5 = vector.load %arg8[%c0_3, %c0_4] : memref<16x16xf32, #tpu.memory_space<vmem>>, vector<16x16xf32>
    %cst = arith.constant dense<0.000000e+00> : vector<16x16xf32>
    %6 = tpu.matmul %4, %5, %cst {dimension_numbers = #tpu.dot_dimension_numbers<[1], [0], [0], [1], [0, 0, 1, 1], [], []>} : vector<16x16xf32>, vector<16x16xf32>, vector<16x16xf32> -> vector<16x16xf32>
    %c0_5 = arith.constant 0 : index
    %c0_6 = arith.constant 0 : index
    %7 = vector.load %arg9[%c0_5, %c0_6] : memref<1x16xf32, #tpu.memory_space<vmem>>, vector<1x16xf32>
    %8 = vector.broadcast %7 : vector<1x16xf32> to vector<16x16xf32>
    %9 = arith.addf %6, %8 : vector<16x16xf32>
    %10 = vector.shape_cast %9 : vector<16x16xf32> to vector<1x16x16xf32>
    %c0_7 = arith.constant 0 : index
    %c0_8 = arith.constant 0 : index
    %c0_9 = arith.constant 0 : index
    %11 = vector.load %arg13[%c0_7, %c0_8, %c0_9] : memref<1x8x16xf32, #tpu.memory_space<vmem>>, vector<1x8x16xf32>
    "tpu.trace_start"() <{level = 10 : i32, message = "bqe,ble->bql"}> : () -> ()
    %cst_10 = arith.constant dense<0.000000e+00> : vector<1x8x16xf32>
    %12 = tpu.matmul %11, %10, %cst_10 {dimension_numbers = #tpu.dot_dimension_numbers<[2], [2], [1], [1], [0, 0, 0, 1, 1, 1], [0], [0]>} : vector<1x8x16xf32>, vector<1x16x16xf32>, vector<1x8x16xf32> -> vector<1x8x16xf32>
    "tpu.trace_stop"() : () -> ()
    %c0_11 = arith.constant 0 : index
    %c0_12 = arith.constant 0 : index
    %c0_13 = arith.constant 0 : index
    %13 = vector.load %arg14[%c0_11, %c0_12, %c0_13] : memref<1x8x1xf32, #tpu.memory_space<vmem>>, vector<1x8x1xf32>
    %cst_14 = arith.constant dense<0xFF800000> : vector<1x8xf32>
    %14 = vector.multi_reduction <maximumf>, %12, %cst_14 [2] : vector<1x8x16xf32> to vector<1x8xf32>
    %15 = vector.shape_cast %14 : vector<1x8xf32> to vector<1x8x1xf32>
    %16 = arith.maximumf %13, %15 : vector<1x8x1xf32>
    %17 = arith.subf %13, %16 : vector<1x8x1xf32>
    %18 = math.exp %17 : vector<1x8x1xf32>
    %19 = vector.broadcast %16 : vector<1x8x1xf32> to vector<1x8x16xf32>
    %20 = arith.subf %12, %19 : vector<1x8x16xf32>
    %21 = math.exp %20 : vector<1x8x16xf32>
    %c0_15 = arith.constant 0 : index
    %c0_16 = arith.constant 0 : index
    %c0_17 = arith.constant 0 : index
    %22 = vector.load %arg4[%c0_15, %c0_16, %c0_17] : memref<1x16x8xf32, #tpu.memory_space<vmem>>, vector<1x16x8xf32>
    "tpu.trace_start"() <{level = 10 : i32, message = "bql,blc->bqc"}> : () -> ()
    %cst_18 = arith.constant dense<0.000000e+00> : vector<1x8x8xf32>
    %23 = tpu.matmul %21, %22, %cst_18 {dimension_numbers = #tpu.dot_dimension_numbers<[2], [1], [1], [2], [0, 0, 0, 1, 1, 2], [0], [0]>} : vector<1x8x16xf32>, vector<1x16x8xf32>, vector<1x8x8xf32> -> vector<1x8x8xf32>
    "tpu.trace_stop"() : () -> ()
    %c0_19 = arith.constant 0 : index
    %c0_20 = arith.constant 0 : index
    %c0_21 = arith.constant 0 : index
    %24 = vector.load %arg15[%c0_19, %c0_20, %c0_21] : memref<1x8x8xf32, #tpu.memory_space<vmem>>, vector<1x8x8xf32>
    %25 = vector.broadcast %18 : vector<1x8x1xf32> to vector<1x8x8xf32>
    %26 = arith.mulf %25, %24 : vector<1x8x8xf32>
    %27 = arith.addf %26, %23 : vector<1x8x8xf32>
    %c0_22 = arith.constant 0 : index
    %c0_23 = arith.constant 0 : index
    %c0_24 = arith.constant 0 : index
    %28 = vector.load %arg15[%c0_22, %c0_23, %c0_24] : memref<1x8x8xf32, #tpu.memory_space<vmem>>, vector<1x8x8xf32>
    tpu.vector_store %arg15[%c0_22, %c0_23, %c0_24], %27 {strides = array<i32>} : memref<1x8x8xf32, #tpu.memory_space<vmem>>, vector<1x8x8xf32>,
    %c0_25 = arith.constant 0 : index
    %c0_26 = arith.constant 0 : index
    %c0_27 = arith.constant 0 : index
    %29 = vector.load %arg14[%c0_25, %c0_26, %c0_27] : memref<1x8x1xf32, #tpu.memory_space<vmem>>, vector<1x8x1xf32>
    tpu.vector_store %arg14[%c0_25, %c0_26, %c0_27], %16 {strides = array<i32>} : memref<1x8x1xf32, #tpu.memory_space<vmem>>, vector<1x8x1xf32>,
    %c0_i32_28 = arith.constant 0 : i32
    %30 = arith.cmpi eq, %arg1, %c0_i32_28 : i32
    %31 = arith.extui %30 : i1 to i32
    %c0_i32_29 = arith.constant 0 : i32
    %32 = arith.cmpi ne, %31, %c0_i32_29 : i32
    scf.if %32 {
      %c0_30 = arith.constant 0 : index
      %c0_31 = arith.constant 0 : index
      %c0_32 = arith.constant 0 : index
      %33 = vector.load %arg15[%c0_30, %c0_31, %c0_32] : memref<1x8x8xf32, #tpu.memory_space<vmem>>, vector<1x8x8xf32>
      %34 = vector.extract_strided_slice %33 {offsets = [0, 0, 0], sizes = [1, 8, 4], strides = [1, 1, 1]} : vector<1x8x8xf32> to vector<1x8x4xf32>
      %35 = vector.extract_strided_slice %33 {offsets = [0, 0, 4], sizes = [1, 8, 4], strides = [1, 1, 1]} : vector<1x8x8xf32> to vector<1x8x4xf32>
      %c0_33 = arith.constant 0 : index
      %c0_34 = arith.constant 0 : index
      %c0_35 = arith.constant 0 : index
      %36 = vector.load %arg5[%c0_33, %c0_34, %c0_35] : memref<1x1x4xf32, #tpu.memory_space<vmem>>, vector<1x1x4xf32>
      %37 = vector.shape_cast %36 : vector<1x1x4xf32> to vector<1x1x4xf32>
      %38 = vector.broadcast %37 : vector<1x1x4xf32> to vector<1x8x4xf32>
      %cst_36 = arith.constant 1.000000e-30 : f32
      %39 = vector.broadcast %cst_36 : f32 to vector<1x8x4xf32>
      %40 = arith.maximumf %35, %39 : vector<1x8x4xf32>
      %41 = tpu.reciprocal %40 {approx = true} : vector<1x8x4xf32> -> vector<1x8x4xf32>
      %cst_37 = arith.constant 0.000000e+00 : f32
      %42 = vector.broadcast %cst_37 : f32 to vector<1x8x4xf32>
      %43 = arith.cmpf ogt, %35, %42 : vector<1x8x4xf32>
      %44 = arith.mulf %34, %41 : vector<1x8x4xf32>
      %45 = arith.select %43, %44, %38 : vector<1x8x4xi1>, vector<1x8x4xf32>
      %46 = vector.shape_cast %45 : vector<1x8x4xf32> to vector<8x4xf32>
      %c0_38 = arith.constant 0 : index
      %c0_39 = arith.constant 0 : index
      %47 = vector.load %arg10[%c0_38, %c0_39] : memref<4x32xf32, #tpu.memory_space<vmem>>, vector<4x32xf32>
      %cst_40 = arith.constant dense<0.000000e+00> : vector<8x32xf32>
      %48 = tpu.matmul %46, %47, %cst_40 {dimension_numbers = #tpu.dot_dimension_numbers<[1], [0], [0], [1], [0, 0, 1, 1], [], []>} : vector<8x4xf32>, vector<4x32xf32>, vector<8x32xf32> -> vector<8x32xf32>
      %c0_41 = arith.constant 0 : index
      %c0_42 = arith.constant 0 : index
      %49 = vector.load %arg11[%c0_41, %c0_42] : memref<1x32xf32, #tpu.memory_space<vmem>>, vector<1x32xf32>
      %50 = vector.broadcast %49 : vector<1x32xf32> to vector<8x32xf32>
      %51 = arith.addf %48, %50 : vector<8x32xf32>
      %c0_43 = arith.constant 0 : index
      %c0_44 = arith.constant 0 : index
      %52 = vector.load %arg12[%c0_43, %c0_44] : memref<8x32xf32, #tpu.memory_space<vmem>>, vector<8x32xf32>
      tpu.vector_store %arg12[%c0_43, %c0_44], %51 {strides = array<i32>} : memref<8x32xf32, #tpu.memory_space<vmem>>, vector<8x32xf32>,
    } else {
    }
    return
  }
  func.func @transform_0(%arg0: i32, %arg1: i32) -> (i32, i32, i32) {
    %c0_i32 = arith.constant 0 : i32
    %c0_i32_0 = arith.constant 0 : i32
    %c0_i32_1 = arith.constant 0 : i32
    return %arg0, %c0_i32, %c0_i32_0 : i32, i32, i32
  }
  func.func @transform_1(%arg0: i32, %arg1: i32) -> (i32, i32, i32) {
    %c0_i32 = arith.constant 0 : i32
    %c0_i32_0 = arith.constant 0 : i32
    return %arg0, %arg1, %c0_i32 : i32, i32, i32
  }
  func.func @transform_2(%arg0: i32, %arg1: i32) -> (i32, i32, i32) {
    %c0_i32 = arith.constant 0 : i32
    %c0_i32_0 = arith.constant 0 : i32
    return %arg0, %arg1, %c0_i32 : i32, i32, i32
  }
  func.func @transform_3(%arg0: i32, %arg1: i32) -> (i32, i32, i32) {
    %c0_i32 = arith.constant 0 : i32
    %c0_i32_0 = arith.constant 0 : i32
    %c0_i32_1 = arith.constant 0 : i32
    return %arg0, %c0_i32, %c0_i32_0 : i32, i32, i32
  }
  func.func @transform_4(%arg0: i32, %arg1: i32) -> (i32, i32) {
    %c0_i32 = arith.constant 0 : i32
    %c0_i32_0 = arith.constant 0 : i32
    %c0_i32_1 = arith.constant 0 : i32
    return %c0_i32, %c0_i32_0 : i32, i32
  }
  func.func @transform_5(%arg0: i32, %arg1: i32) -> (i32, i32) {
    %c0_i32 = arith.constant 0 : i32
    %c0_i32_0 = arith.constant 0 : i32
    %c0_i32_1 = arith.constant 0 : i32
    return %c0_i32, %c0_i32_0 : i32, i32
  }
  func.func @transform_6(%arg0: i32, %arg1: i32) -> (i32, i32) {
    %c0_i32 = arith.constant 0 : i32
    %c0_i32_0 = arith.constant 0 : i32
    %c0_i32_1 = arith.constant 0 : i32
    return %c0_i32, %c0_i32_0 : i32, i32
  }
  func.func @transform_7(%arg0: i32, %arg1: i32) -> (i32, i32) {
    %c0_i32 = arith.constant 0 : i32
    %c0_i32_0 = arith.constant 0 : i32
    %c0_i32_1 = arith.constant 0 : i32
    return %c0_i32, %c0_i32_0 : i32, i32
  }
  func.func @transform_8(%arg0: i32, %arg1: i32) -> (i32, i32) {
    %c0_i32 = arith.constant 0 : i32
    %c0_i32_0 = arith.constant 0 : i32
    %c0_i32_1 = arith.constant 0 : i32
    return %c0_i32, %c0_i32_0 : i32, i32
  }
  func.func @transform_9(%arg0: i32, %arg1: i32) -> (i32, i32) {
    %c0_i32 = arith.constant 0 : i32
    %c0_i32_0 = arith.constant 0 : i32
    %c0_i32_1 = arith.constant 0 : i32
    return %c0_i32, %c0_i32_0 : i32, i32
  }
  func.func @transform_10(%arg0: i32, %arg1: i32) -> (i32, i32) {
    %c0_i32 = arith.constant 0 : i32
    %c0_i32_0 = arith.constant 0 : i32
    return %arg0, %c0_i32 : i32, i32
  }
}

</mosaic_0001>

<bundles_post_ra>
// kernel: tpu_custom_call.1
= control target key start
LH: loop header
LB: loop body
LE: loop exit
PB: predicated region body
PF: predicated region fallthrough
CT: control target
= control target key end

     0   :  { %s1777_s0 = inlined_call_operand.vmem [shape: f32[4,8,16], index: 0, kind: input, shape index: {}]   ;;  %s1778_s1 = inlined_call_operand.vmem [shape: f32[4,16,16], index: 1, kind: input, shape index: {}]   ;;  %s1779_s2 = inlined_call_operand.vmem [shape: f32[4,16,8], index: 2, kind: input, shape index: {}]   ;;  %s1780_s3 = inlined_call_operand.hbm [shape: f32[4,1,4], index: 3, kind: input, shape index: {}]   ;;  %s1781_s4 = inlined_call_operand.hbm [shape: f32[16,16], index: 4, kind: input, shape index: {}]   ;;  %s1782_s5 = inlined_call_operand.vmem [shape: f32[1,16], index: 5, kind: input, shape index: {}]   ;;  %s1783_s6 = inlined_call_operand.vmem [shape: f32[16,16], index: 6, kind: input, shape index: {}]   ;;  %s1784_s7 = inlined_call_operand.vmem [shape: f32[1,16], index: 7, kind: input, shape index: {}]   ;;  %s1785_s8 = inlined_call_operand.vmem [shape: f32[4,32], index: 8, kind: input, shape index: {}]   ;;  %s1786_s9 = inlined_call_operand.vmem [shape: f32[1,32], index: 9, kind: input, shape index: {}]   ;;  %s1787_s10 = inlined_call_operand.hbm [shape: f32[32,32], index: 10, kind: output, shape index: {}]  }
   0x1   :  { %1795 = sst [smem:[#allocation17_spill]] %s1781_s4 }
   0x2   :  { %15 = vsyncpa [#allocation6], 0 }
   0x3   :  { %17 = vsyncpa [#allocation6 + $0x1], 0 }
   0x4   :  { %18 = vsyncpa [#allocation9], 0 }
   0x5   :  { %19 = vsyncpa [#allocation7], 0 }
   0x6   :  { %21 = vsyncpa [#allocation7 + $0x1], 0  ;;  %s1518_s13 = smov 0   ;;  %s1520_s14 = smov 0  }
   0x7   :  { %s1522_s15 = smov 0   ;;  %s1524_s16 = smov 0  }
   0x8   :  { %s1526_s17 = smov 0   ;;  %s1528_s18 = smov 0  }
   0x9 LB: > { %1796 = sst [smem:[#allocation14_spill]] %s1429_s13  ;;  %s1120_s19 = sadd.s32 4294967295, %s1449_s18   ;;  %s1449_s18 = sphi %s1528_s18, %s27_s18   ;;  %s1445_s17 = sphi %s1526_s17, %s1821_s17   ;;  %s1441_s16 = sphi %s1524_s16, %s1820_s16   ;;  %s1437_s15 = sphi %s1522_s15, %s1819_s15   ;;  %s1433_s14 = sphi %s1520_s14, %s1818_s14   ;;  %s1429_s13 = sphi %s1518_s13, %s1817_s13  }
   0xa   : > { %s1121_s20 = sadd.s32 4294967294, %s1449_s18   ;;  %p141_p0 = scmp.ne.s32.totalorder %s1433_s14, %s1429_s13 }
   0xb   : > { %p1552_p1 = scmp.eq.s32.totalorder %s1120_s19, 0  ;;  %p1556_p2 = scmp.eq.s32.totalorder %s1120_s19, 3 }
   0xc   : > { %p297_p3 = scmp.eq.s32.totalorder %s1121_s20, 3  ;;  %p1122_p5 = scmp.ge.s32.totalorder %s1449_s18, 1 }
   0xd   : > { %s1797_s21 = scalar_select %p1552_p1, 1, 0 }
   0xe   : > { %s1798_s22 = scalar_select %p1556_p2, 1, 0 }
   0xf   : > { %p1562_p4 = por %p1552_p1, %p141_p0  ;;  %p1567_p6 = por %p297_p3, %p141_p0 }
  0x10   : > { %p304_p7 = scmp.lt.s32.totalorder %s1449_s18, 5  ;;  %s1451_s26 = smov [#allocation8]  }
  0x11   : > { %s1799_s23 = scalar_select %p1562_p4, 1, 0 }
  0x12   : > { %s1800_s24 = scalar_select %p1567_p6, 1, 0 }
  0x13   : > { %p1572_p8 = pnand %p1122_p5, %p304_p7  ;;  %s316_s27 = sshll.u32 %s1451_s26, 4  ;;  %s317_s27 = int_to_ptr.vmem [resolvable:$true] %s316_s27 }
  0x14   : > { %1801 = sst [smem:[#allocation15_spill]] %s1800_s24  ;;  %s39_s29 = sadd.s32 1, %s1445_s17 }
  0x15   : > { %s1802_s25 = scalar_select %p1572_p8, 1, 0 }
  0x16   : > { %p1223_p9 = pneg %p1572_p8  ;;  %s1804_s4 = sld [smem:[#allocation17_spill]] }
  0x18   : > { %p1580_p10 = pnand %p1223_p9, %p1552_p1 }
  0x1a   : > { %p1307_p12 = pneg %p1580_p10 }
  0x1c   : > { %s1305_s12 = scalar_lea.hbm %s1804_s4, 256 }
  0x1d   : > { %p1306_p11 = scmp.ne.s32.totalorder %s1804_s4, %s1305_s12  ;;  %p1312_p3 = scmp.lt.u32.totalorder %s1305_s12, %s1804_s4 }
  0x1f   : > { %p1308_p13 = pnand %p1307_p12, %p1306_p11 }
  0x21   : > { %p1309_p0 = pneg %p1308_p13 }
  0x23   : > { %p1314_p5 = pnand %p1312_p3, %p1309_p0 }
  0x25   : > { %1317 = shalt.err (!%p1314_p5)
}
  0x26   : > { %s1318_s13 = scalar_lea.vmem %s317_s27, 256  ;;  %p1326_p1 = scmp.lt.s32.totalorder %s317_s27, %s317_s27 }
  0x27   : > { %p1319_p7 = scmp.ne.s32.totalorder %s317_s27, %s1318_s13  ;;  %p1327_p4 = scmp.lt.s32.totalorder %s1318_s13, %s1318_s13 }
  0x29   : > { %p1321_p9 = pnand %p1319_p7, %p1307_p12  ;;  %p1328_p8 = por %p1327_p4, %p1326_p1 }
  0x2b   : > { %p1322_p6 = pneg %p1321_p9 }
  0x2d   : > { %p1329_p2 = pnand %p1328_p8, %p1322_p6 }
  0x2f   : > { %1332 = shalt.err (!%p1329_p2)
}
  0x30   : > { %s1452_s30 = smov 128   ;;  %s1453_s24 = smov 8  }
  0x31   : > { %1226 = dma.hbm_to_vmem [thread:$0]  (!%p1580_p10), %s1804_s4, 256, %s317_s27, [#allocation9], %s1452_s30, %s1452_s30, %s1453_s24  }
  0x32   : > { %p41_p1 = scmp.ge.s32.totalorder %s39_s29, 4  ;;  %p135_p2 = scmp.ne.s32.totalorder %s1437_s15, %s1433_s14 }
  0x33   : > { %p136_p4 = scmp.eq.s32.totalorder %s1449_s18, 0  ;;  %s128_s13 = sadd.s32 1, %s1437_s15 }
  0x34   : > { %s1823_s29 = smov (%p41_p1, %s39_s29), 0  ;;  %p1806_p6 = scmp.ne.s32.totalorder %s1798_s22, 0 }
  0x35   : > { %1805 = sst [smem:[#allocation16_spill]] %s1823_s29  ;;  %s125_s20 = ssub.s32 %s1445_s17, %s1823_s29 }
  0x36   : > { %p1609_p8 = por %p1806_p6, %p135_p2  ;;  %p137_p11 = por %p136_p4, %p135_p2 }
  0x37   : > { %p126_p12 = scmp.eq.s32.totalorder %s125_s20, 0  ;;  %s378_s28 = sand.u32 1, %s1437_s15  }
  0x38   : > { %p1236_p13 = scmp.lt.s32.totalorder %s1449_s18, 4  ;;  %s1125_s27 = sshll.u32 %s1445_s17, 4 }
  0x39   : > { %s1618_s26 = scalar_select %p126_p12, %s1437_s15, %s128_s13  }
  0x3a   : > { %s381_s30 = scalar_lea.vmem [#allocation5], %s378_s28  ;;  %s1624_s4 = scalar_lea.hbm %s1780_s3, %s1125_s27 }
  0x3b   : > { %s388_s24 = sshll.u32 %s381_s30, 4  ;;  %p1628_p10 = pnand %p1236_p13, %p137_p11  ;;  %s1626_s24 = int_to_ptr.vmem [resolvable:$true] %s388_s24 }
  0x3c   : > { %s379_s13 = scalar_lea.sflag [#allocation6], %s378_s28  ;;  %s1333_s20 = scalar_lea.hbm %s1624_s4, 16 }
  0x3d   : > { %p1334_p0 = scmp.ne.s32.totalorder %s1624_s4, %s1333_s20  ;;  %p1335_p3 = pneg %p1628_p10 }
  0x3e   : > { %s1338_s11 = scalar_lea.hbm %s1780_s3, 64  ;;  %p1339_p9 = scmp.lt.u32.totalorder %s1624_s4, %s1780_s3 }
  0x3f   : > { %p1336_p5 = pnand %p1335_p3, %p1334_p0  ;;  %p1340_p1 = scmp.lt.u32.totalorder %s1338_s11, %s1333_s20 }
  0x40   : > { %p1342_p4 = scmp.lt.u32.totalorder %s1333_s20, %s1624_s4 }
  0x41   : > { %p1337_p7 = pneg %p1336_p5  ;;  %p1341_p2 = por %p1340_p1, %p1339_p9 }
  0x43   : > { %p1343_p6 = por %p1342_p4, %p1341_p2 }
  0x45   : > { %p1344_p11 = pnand %p1343_p6, %p1337_p7 }
  0x47   : > { %1347 = shalt.err (!%p1344_p11)
}
  0x48   : > { %s1348_s28 = scalar_lea.vmem %s1626_s24, 16  ;;  %s1454_s27 = smov [#allocation5]  }
  0x49   : > { %p1349_p12 = scmp.ne.s32.totalorder %s1626_s24, %s1348_s28  ;;  %s1353_s30 = sshll.u32 %s1454_s27, 4  ;;  %s1354_s30 = int_to_ptr.vmem [resolvable:$false] %s1353_s30 }
  0x4a   : > { %s1355_s29 = scalar_lea.vmem %s1354_s30, 32  ;;  %p1356_p5 = scmp.lt.s32.totalorder %s1626_s24, %s1354_s30 }
  0x4b   : > { %p1351_p13 = pnand %p1349_p12, %p1335_p3  ;;  %p1357_p9 = scmp.lt.s32.totalorder %s1355_s29, %s1348_s28 }
  0x4d   : > { %p1352_p0 = pneg %p1351_p13  ;;  %p1358_p1 = por %p1357_p9, %p1356_p5 }
  0x4f   : > { %p1359_p2 = pnand %p1358_p1, %p1352_p0 }
  0x51   : > { %1362 = shalt.err (!%p1359_p2)
}
  0x52   : > { %1230 = dma.hbm_to_vmem [thread:$0]  (!%p1628_p10), %s1624_s4, 16, %s1626_s24, %s379_s13  }
  0x53   : > { %p1809_p7 = scmp.ne.s32.totalorder %s1802_s25, 0 }
  0x54   : > { %s1660_s20 = sand.u32 (!%p1809_p7), 1, %s1433_s14   ;;  %p1810_p3 = scmp.ne.s32.totalorder (!%p1809_p7), %s1799_s23, 0 }
  0x55   : > { %397 = sbr.rel (%p1809_p7) target bundleno = 1643 (0x66b), region = 60  ;;  %s400_s11 = scalar_lea.sflag (!%p1809_p7), [#allocation6], %s1660_s20 }
  0x5c   : > { %1416 = dma.done.wait (%p1810_p3), %s400_s11, 16  }
  0x5d   : > { %1418 = vsyncadd (%p1810_p3), %s400_s11, 4294967280  ;;  %p1811_p4 = scmp.ne.s32.totalorder %s1797_s21, 0 }
  0x5f   : > { %1420 = dma.done.wait (%p1811_p4), [#allocation9], 256  }
  0x60   : > { %1422 = vsyncadd (%p1811_p4), [#allocation9], 4294967040  ;;  %p464_p10 = scmp.lt.s32.totalorder %s1441_s16, 3  ;;  %v1455_v0 = vmov 0.0|0.0   ;;  %vm579_vm0 = vcmask 64512   ;;  %vm1456_vm1 = vmmov 0  }
  0x61   : > { %1201 = vmatprep.subr.bf16.mxu0 %v1455_v0  ;;  %v1457_v1 = vmov 0.0   ;;  %vm502_vm2 = vcmask 130048   ;;  %v583_v2 = vld [vmem:[%s1783_s6] sm:$0xff]  ;;  %v584_v3 = vld [vmem:[%s1783_s6 + $0x8] sm:$0xff]  ;;  %vm577_vm4 = vcmask 7168   ;;  %v1458_v25 = vmov -inf  }
  0x62   : > { %s465_s4 = scalar_select %p464_p10, %s1441_s16, 3  ;;  %1172 = vmatprep.mubr.msk.f32.mxu0 %vm1456_vm1, %v1457_v1  ;;  %580 = vst.msk [vmem:[#allocation4] sm:$0xff] %vm579_vm0, %v1457_v1  ;;  %v493_v4 = vld [vmem:[#allocation8] sm:$0xff]  ;;  %v1204_v5 = vpack.c.bf16 %v584_v3, %v583_v2  ;;  %v494_v6 = vld [vmem:[#allocation8 + $0x8] sm:$0xff]  ;;  %vm1210_vm3 = vmpackc.low %vm502_vm2, %vm502_vm2  ;;  %v1459_v29 = vmov 0   ;;  %vm897_vm5 = vcmask 1043456  }
  0x63   : > { %v1202_v8 = vpack.c.bf16 %v494_v6, %v493_v4  ;;  %v1136_v14 = vld [vmem:[%s1784_s7] ss:$0 sm:$0xff]  ;;  %578 = vst.msk [vmem:[#allocation3] sm:$0xff] %vm577_vm4, %v1458_v25  ;;  %1297 = vset.pattern.permute.xlu0 %v1459_v29  ;;  %1298 = vset.pattern.permute.xlu1 %v1459_v29  ;;  %s1460_s13 = smov 124   ;;  %s1461_s30 = smov 4   ;;  %vm894_vm7 = vcmask 31744  }
  0x64   : > { %s1151_s23 = sshll.u32 %s465_s4, 4  ;;  %s1129_s22 = sshll.u32 %s465_s4, 3  ;;  %1205 = vmatprep.subr.bf16.mxu1 %v1204_v5  ;;  %v1134_v15 = vld [vmem:[%s1782_s5] ss:$0 sm:$0xff]  ;;  %vm971_vm8 = vcmask 261120  }
  0x65   : > { %s476_s21 = scalar_lea.vmem %s1778_s1, %s1151_s23  ;;  %s486_s27 = scalar_lea.vmem %s1779_s2, %s1151_s23  ;;  %1207 = vmatpush3.bf16.msra.mxu1 %v1204_v5  ;;  %1203 = vmatpush3.bf16.msra.mxu0 %v1202_v8  ;;  %v883_v49 = vld [vmem:[%s1785_s8] sm:$0xf] }
  0x66   : > { %v581_v7 = vld [vmem:[%s476_s21] sm:$0xff]  ;;  %s467_s4 = scalar_lea.vmem %s1777_s0, %s1129_s22  ;;  %v771_v10 = vld [vmem:[%s486_s27 + $0x8] sm:$0xff]  ;;  %1208 = vmatprep.subr.bf16.mxu0 %v1455_v0  ;;  %1212 = vmatprep.subr.bf16.mxu1 %v1455_v0  ;;  %s1812_s29 = scalar_lea.vmem [#allocation5], %s1660_s20 }
  0x67   : > { %1179 = vmatprep.mubr.msk.f32.mxu1 %vm502_vm2, %v581_v7  ;;  %v770_v9 = vld [vmem:[%s486_s27] sm:$0xff]  ;;  %v582_v11 = vld [vmem:[%s476_s21 + $0x8] sm:$0xff]  ;;  %s1128_s11 = sshll.u32 %s1660_s20, 3  ;;  %s974_s28 = scalar_lea.sflag [#allocation7], %s1660_s20 }
  0x68   : > { %v1213_v12 = vpack.c.bf16 %v771_v10, %v770_v9  ;;  %v492_v13 = vld [vmem:[%s467_s4] sm:$0xff]  ;;  %1180 = vmatmul.mubr.msk.f32.vlgmr.msra.gmra.mrb[0].mxu1 %vm502_vm2, %v582_v11  ;;  %s1148_s4 = sshll.u32 %s1441_s16, 7  ;;  %s463_s12 = scalar_lea.vmem [#allocation10], %s1128_s11 }
  0x69   : > { %1173 = vmatmul.mubr.msk.f32.vlgmr.msra.gmra.mrb[0].mxu0 %vm502_vm2, %v492_v13  ;;  %1193 = vmatprep.mubr.msk.f32.mxu1 %vm1456_vm1, %v1457_v1  ;;  %v845_v40 = vld [vmem:[#allocation4] sm:$0xff]  ;;  %v1143_v52 = vld [vmem:[%s1812_s29] ss:$0 sm:$0xff]  ;;  %s987_s23 = sshll.u32 %s463_s12, 4  ;;  %s1462_s16 = smov [#allocation10]   ;;  %s1731_s23 = int_to_ptr.vmem [resolvable:$true] %s987_s23 }
  0x6a   : > { %1186 = vmatprep.mubr.msk.f32.mxu0 %vm1456_vm1, %v1457_v1  ;;  %1214 = vmatpush3.bf16.msra.mxu1 %v1213_v12  ;;  %v754_v30 = vld [vmem:[#allocation3] sm:$0xff]  ;;  %v1144_v57 = vld [vmem:[%s1786_s9] ss:$0 sm:$0xff]  ;;  %s1363_s27 = scalar_lea.vmem %s1731_s23, 128 }
  0x6b   : > { %1196 = vmatprep.subr.mxu1 %v1457_v1  ;;  %p1364_p6 = scmp.ne.s32.totalorder %s1731_s23, %s1363_s27 }
  0x6d   : > { %p1365_p11 = pnand %p1364_p6, %p1609_p8 }
  0x6f   : > { %p1366_p12 = pneg %p1365_p11 }
 0x13b   : > { %v1181_v16 = vpop.f32.mrb[0].mxu1 }
 0x13c   : > { %v572_v17 = vpop.f32.mrb[0].mxu0  ;;  %v671_v18 = vadd.f32 %v1181_v16, %v1136_v14  ;;  %v665_v20 = vpop.f32.mrb[1].mxu1 }
 0x13d   : > { %v573_v19 = vadd.f32 %v1134_v15, %v572_v17  ;;  %v1174_v21 = vpop.f32.mrb[1].mxu0  ;;  %v666_v22 = vadd.f32 %v1136_v14, %v665_v20 }
 0x13f   : > { %576 = vst.msk [vmem:[#allocation2] sm:$0xff] %vm502_vm2, %v573_v19  ;;  %v1209_v23 = vpack.c.bf16 %v671_v18, %v666_v22 }
 0x141   : > { %1211 = vmatpush3.bf16.xpose.msk.msra.mxu0 %vm1210_vm3, %v1209_v23 }
 0x146   : > { %v674_v24 = vld [vmem:[#allocation2] sm:$0xff] }
 0x148   : > { %1187 = vmatmul.mubr.msk.f32.vlgmr.msra.gmra.mrb[2].mxu0 %vm502_vm2, %v674_v24 }
 0x21b   : > { %v750_v26 = vpop.f32.mrb[2].mxu0 }
 0x21c   : > { %v1188_v27 = vpop.f32.mrb[3].mxu0  ;;  %v755_v28 = vsel %vm502_vm2, %v750_v26, -inf }
 0x21d   : > { %756 = vmax.xlane.f32.xlu0 %v755_v28 }
 0x2aa   : > { %v757_v31 = vpop.xlane.xlu0 %756 }
 0x2ab   : > { %v758_v32 = vmax.f32 %v754_v30, %v757_v31 }
 0x2ad   : > { %v759_v33 = vsub.f32 %v754_v30, %v758_v32  ;;  %856 = vst.msk [vmem:[#allocation3] sm:$0xff] %vm577_vm4, %v758_v32  ;;  %764 = vperm.xlu0 %1297, %v758_v32  }
 0x2af   : > { %v760_v34 = vmul.f32 1.442695, %v759_v33 }
 0x2b1   : > { %1299 = vpow2.f32 %v760_v34 }
 0x2bb   : > { %v1300_v35 = vpop.eup %1299 }
 0x2bc   : > { %848 = vperm.xlu1 %1298, %v1300_v35  }
 0x32c   : > { %v765_v36 = vpop.permute.xlu0 %764 }
 0x32d   : > { %v767_v37 = vsub.f32 %v750_v26, %v765_v36 }
 0x32f   : > { %v768_v38 = vmul.f32 1.442695, %v767_v37 }
 0x331   : > { %1301 = vpow2.f32 %v768_v38 }
 0x33b   : > { %v1302_v39 = vpop.eup %1301  ;;  %v849_v41 = vpop.permute.xlu1 %848 }
 0x33c   : > { %1194 = vmatmul.mubr.msk.f32.vlgmr.msra.gmra.mrb[2].mxu1 %vm502_vm2, %v1302_v39  ;;  %v851_v42 = vmul.f32 %v849_v41, %v845_v40 }
 0x33d   : > { %1198 = vmatprep.mubr.msk.f32.mxu1 %vm1456_vm1, %v1457_v1  ;;  %1197 = vmatpush3.msk.msra.mxu1 %vm897_vm5, %v883_v49 }
 0x40f   : > { %v841_v43 = vpop.f32.mrb[2].mxu1 }
 0x410   : > { %v852_v44 = vadd.f32 %v851_v42, %v841_v43  ;;  %v1195_v45 = vpop.f32.mrb[3].mxu1 }
 0x412   : > { %854 = vst.msk [vmem:[#allocation4] sm:$0xff] %vm579_vm0, %v852_v44 }
 0x419   : > { %v860_v46 = vld [vmem:[#allocation4] sm:$0xff] }
 0x41a   : > { %v867_v47 = vmax.f32 %v860_v46, 1e-30  ;;  %vm869_vm6 = vcmp.gt.f32.partialorder %v860_v46, 0.0 }
 0x41c   : > { %1303 = vrcp.f32 %v867_v47 }
 0x426   : > { %v1304_v48 = vpop.eup %1303 }
 0x427   : > { %871 = vrot.lane.b32.xlu1 %v1304_v48, %s1460_s13 }
 0x499   : > { %v872_v50 = vpop.permute.xlu1 %871 }
 0x49a   : > { %v874_v51 = vmul.f32 %v872_v50, %v860_v46 }
 0x49c   : > { %876 = vrot.lane.b32.xlu1 %v874_v51, %s1461_s30 }
 0x4a0   : > { %879 = vrot.lane.b32.xlu1 %v1143_v52, %s1461_s30  ;;  %s1367_s30 = sshll.u32 %s1462_s16, 4  ;;  %s1368_s30 = int_to_ptr.vmem [resolvable:$false] %s1367_s30 }
 0x4a1   : > { %s1369_s29 = scalar_lea.vmem %s1368_s30, 256  ;;  %p1370_p13 = scmp.lt.s32.totalorder %s1731_s23, %s1368_s30 }
 0x4a2   : > { %p1371_p0 = scmp.lt.s32.totalorder %s1369_s29, %s1363_s27 }
 0x4a4   : > { %p1372_p5 = por %p1371_p0, %p1370_p13 }
 0x4a6   : > { %p1373_p9 = pnand %p1372_p5, %p1366_p12 }
 0x50e   : > { %v877_v53 = vpop.permute.xlu1 %876 }
 0x512   : > { %v880_v54 = vpop.permute.xlu1 %879 }
 0x513   : > { %v882_v55 = vsel %vm869_vm6, %v877_v53, %v880_v54 }
 0x514   : > { %892 = vrot.lane.b32.xlu1 %v882_v55, %s1460_s13  ;;  %s1729_s13 = scalar_lea.hbm %s1787_s10, %s1148_s4 }
 0x586   : > { %v893_v56 = vpop.permute.xlu1 %892 }
 0x587   : > { %1199 = vmatmul.mubr.msk.f32.vlgmr.msra.gmra.mrb[4].mxu1 %vm894_vm7, %v893_v56 }
 0x65a   : > { %v967_v58 = vpop.f32.mrb[4].mxu1 }
 0x65b   : > { %v968_v59 = vadd.f32 %v1144_v57, %v967_v58  ;;  %v1200_v60 = vpop.f32.mrb[5].mxu1 }
 0x65d   : > { %972 = vst.msk [vmem:[%s463_s12] sm:$0xff] %vm971_vm8, %v968_v59 }
 0x65e   : > { %1376 = shalt.err (!%p1373_p9)
}
 0x65f   : > { %s1377_s20 = scalar_lea.hbm %s1729_s13, 128  ;;  %s1381_s24 = scalar_lea.hbm %s1787_s10, 512 }
 0x660   : > { %p1378_p1 = scmp.ne.s32.totalorder %s1729_s13, %s1377_s20  ;;  %p1382_p3 = scmp.lt.u32.totalorder %s1729_s13, %s1787_s10 }
 0x661   : > { %p1383_p4 = scmp.lt.u32.totalorder %s1381_s24, %s1377_s20  ;;  %p1385_p6 = scmp.lt.u32.totalorder %s1377_s20, %s1729_s13 }
 0x662   : > { %p1379_p2 = pnand %p1378_p1, %p1609_p8 }
 0x663   : > { %p1384_p10 = por %p1383_p4, %p1382_p3 }
 0x664   : > { %p1380_p7 = pneg %p1379_p2 }
 0x665   : > { %p1386_p11 = por %p1385_p6, %p1384_p10 }
 0x667   : > { %p1387_p12 = pnand %p1386_p11, %p1380_p7 }
 0x669   : > { %1390 = shalt.err (!%p1387_p12)
}
 0x66a   : > { %1221 = dma.vmem_to_hbm [thread:$0]  (%p1609_p8), %s1731_s23, 128, %s1729_s13, %s974_s28  }
 0x66b PF: > { %s1813_s21 = sld [smem:[#allocation14_spill]]  ;;  %s1814_s22 = sld [smem:[#allocation15_spill]] }
 0x66c   : > { %p1238_p13 = scmp.ge.s32.totalorder %s1449_s18, 2 }
 0x671   : > { %s999_s27 = sand.u32 1, %s1813_s21   ;;  %p1815_p0 = scmp.ne.s32.totalorder %s1814_s22, 0 }
 0x672   : > { %s1000_s16 = scalar_lea.sflag [#allocation7], %s999_s27 }
 0x673   : > { %p1232_p5 = pnand %p1238_p13, %p1815_p0 }
 0x675   : > { %1424 = dma.done.wait (!%p1232_p5), %s1000_s16, 128  }
 0x676   : > { %1426 = vsyncadd (!%p1232_p5), %s1000_s16, 4294967168  ;;  %s27_s18 = sadd.s32 1, %s1449_s18   ;;  %s1816_s19 = sld [smem:[#allocation16_spill]] }
 0x677   : > { %p24_p9 = scmp.ge.s32.totalorder %s27_s18, 6   ;;  %s1817_s13 = smov %s1433_s14 }
 0x678   : > { %s1818_s14 = smov %s1437_s15  ;;  %s1819_s15 = smov %s1618_s26 }
 0x679   : > { %s1820_s16 = smov %s1445_s17  ;;  %26 = sbr.rel (!%p24_p9) target bundleno = 9 (0x9), region = 126 }
 0x67c   : > { %s1821_s17 = smov %s1816_s19 }
 0x680   :  { %1005 = vsyncpa [#allocation6], 1 }
 0x681   :  { %1007 = vsyncpa [#allocation6 + $0x1], 1 }
 0x682   :  { %1008 = vsyncpa [#allocation9], 1 }
 0x683   :  { %1009 = vsyncpa [#allocation7], 1 }
 0x684   :  { %1011 = vsyncpa [#allocation7 + $0x1], 1 }

</bundles_post_ra>
